<compile_context>
chip_gen: v6e
topology: v6e:2x2x1
jax: 0.10.0
libtpu: 0.0.40
codegen_flags: <defaults>
</compile_context>

<pallas_src>
import jax
import jax.numpy as jnp
from jax.experimental import pallas as pl
from jax.experimental.pallas import tpu as pltpu


def _round_up(n: int, m: int) -> int:
    return ((n + m - 1) // m) * m


def _choose_tile_rows(n_rows: int, lane_w: int, itemsize: int, sublane: int) -> int:
    """Rows per grid step for the (n_rows, lane_w) input slab."""
    padded_w = _round_up(lane_w, 128)
    # ~2 MiB of real data per tile amortizes the ~0.35 us per-grid-step overhead.
    target = max(512, (2 << 20) // (itemsize * lane_w))
    # Double-buffered x tiles stay <= ~24 MiB: fits the 32 MiB scoped-VMEM cap we
    # request, and well under v7x's 64 MiB/TC physical VMEM.
    cap = max(sublane, (12 << 20) // (itemsize * padded_w))
    tb = min(target, cap)
    # Prefer >= 8 grid steps (pipelining + dual-TC sharding on v7x) while keeping
    # tiles >= 512 rows.
    tb = min(tb, max(512, -(-n_rows // 8)))
    return max(sublane, (tb // sublane) * sublane)


def _make_linear_kernel(n_seg: int, seg_w: int):
    def kernel(bias_ref, x_ref, w_ref, o_ref):
        # bias_ref: SMEM (1,)               -- scalar-prefetched bias
        # x_ref:    VMEM (tb, n_seg*seg_w)  -- batch tile (n_seg original rows per row)
        # w_ref:    VMEM (1,  n_seg*seg_w)  -- weight row (tiled n_seg times), resident
        # o_ref:    VMEM (tb, n_seg)
        # N=1 linear: VPU broadcast-multiply + XLU segmented lane reduce; MXU stays idle
        # and the kernel remains HBM-bandwidth-bound.
        tb = x_ref.shape[0]
        prod = x_ref[...] * w_ref[...]
        seg = jnp.sum(prod.reshape(tb, n_seg, seg_w), axis=-1,
                      dtype=jnp.float32)                      # explicit f32 accumulate
        o_ref[...] = (seg + bias_ref[0]).astype(o_ref.dtype)
    return kernel


@jax.jit
def linear_model_forward(x, weight, bias):
    """x: (B, W), weight: (1, W) (PyTorch nn.Linear layout), bias: (1,) -> (B, 1)."""
    B, W = x.shape
    out_dtype = x.dtype

    # Narrow-width repack: fold k = 128 // W consecutive rows into one 128-lane row.
    k = 128 // W if (W <= 128 and 128 % W == 0) else 1
    if k > 1 and B % k != 0:
        k = 1  # padding would materialize an HBM copy of x; fall back to generic path
    if k > 1:
        x_in = x.reshape(B // k, k * W)   # row-major bitcast, no HBM traffic
        w_in = jnp.tile(weight, (1, k))   # (1, k*W) resident weight row
    else:
        x_in, w_in = x, weight

    n_rows, lane_w = x_in.shape
    itemsize = jnp.dtype(x_in.dtype).itemsize
    sublane = {4: 8, 2: 16, 1: 32}.get(itemsize, 8)
    tb = _choose_tile_rows(n_rows, lane_w, itemsize, sublane)
    if tb >= n_rows:
        tb = n_rows  # single block == full array dims (no OOB padding at all)
    grid = (pl.cdiv(n_rows, tb),)
    # Last block may be partial: OOB input rows read unspecified data, but their
    # outputs land in OOB output rows and are dropped (no cross-row dependence).

    out = pl.pallas_call(
        _make_linear_kernel(k, W),
        out_shape=jax.ShapeDtypeStruct((n_rows, k), out_dtype),
        grid_spec=pltpu.PrefetchScalarGridSpec(
            num_scalar_prefetch=1,  # bias -> SMEM scalar, no VMEM DMA stream
            grid=grid,
            in_specs=[
                # x: the only large operand; tiled over rows so it auto-pipelines.
                pl.BlockSpec((tb, lane_w), lambda i, b: (i, 0)),
                # weight row: constant index map -> stays resident in VMEM.
                pl.BlockSpec((1, lane_w), lambda i, b: (0, 0)),
            ],
            out_specs=pl.BlockSpec((tb, k), lambda i, b: (i, 0)),
        ),
        compiler_params=pltpu.CompilerParams(
            dimension_semantics=("parallel",),  # independent tiles: dual-TC on v7x
            vmem_limit_bytes=32 << 20,          # > v5e 16 MiB default, < v7x 64 MiB/TC
        ),
    )(bias, x_in, w_in)

    # TODO(synk): if DMA is still exposed after tile enlargement, sweep
    # pipeline_mode=pl.Buffered(3) on the x BlockSpec.
    return out.reshape(B, 1)


if __name__ == "__main__":
    key = jax.random.PRNGKey(0)
    k0, k1, k2, k3 = jax.random.split(key, 4)

    def run_case(batch, width, rng):
        weight = jnp.ones((1, width), dtype=jnp.float32)   # module init: ones_
        bias = jnp.zeros((1,), dtype=jnp.float32)          # module init: zeros_
        x = jax.random.normal(rng, (batch, width), dtype=jnp.float32)
        out = jax.block_until_ready(linear_model_forward(x, weight, bias))
        ref = x @ weight.T + bias
        assert out.shape == (batch, 1), (out.shape, batch)
        assert jnp.allclose(out, ref, atol=1e-4, rtol=1e-4), (batch, width)

    # Primary (spec-like) shape: packed path (k=4), single tile.
    run_case(8, 32, k0)
    # Generic fallback: batch not a multiple of the packing factor.
    run_case(10, 32, k1)
    # Packed path, multi-tile grid with a partial last block (no wrapper pad).
    run_case(2600, 32, k2)
    # Generic wide path (width > 128, not a multiple of 128).
    run_case(300, 200, k3)

    print("KERNEL_OK")
</pallas_src>

<mosaic_0001>
module attributes {stable_mosaic.version = 11 : i64} {
  func.func @kernel(%arg0: i32, %arg1: memref<1xf32, #tpu.memory_space<smem>>, %arg2: memref<2x128xf32, #tpu.memory_space<vmem>>, %arg3: memref<1x128xf32, #tpu.memory_space<vmem>>, %arg4: memref<2x4xf32, #tpu.memory_space<vmem>>) attributes {dimension_semantics = [#tpu.dimension_semantics<parallel>], iteration_bounds = array<i64: 1>, scalar_prefetch = 1 : i64, scratch_operands = 0 : i64, tpu.core_type = #tpu.core_type<tc>, window_params = [{transform_indices = @transform_0, window_bounds = array<i64: 2, 128>}, {pipeline_mode = #tpu.pipeline_mode<synchronous>, transform_indices = @transform_1, window_bounds = array<i64: 1, 128>}, {transform_indices = @transform_2, window_bounds = array<i64: 2, 4>}]} {
    %c0 = arith.constant 0 : index
    %c0_0 = arith.constant 0 : index
    %0 = vector.load %arg2[%c0, %c0_0] : memref<2x128xf32, #tpu.memory_space<vmem>>, vector<2x128xf32>
    %c0_1 = arith.constant 0 : index
    %c0_2 = arith.constant 0 : index
    %1 = vector.load %arg3[%c0_1, %c0_2] : memref<1x128xf32, #tpu.memory_space<vmem>>, vector<1x128xf32>
    %2 = vector.broadcast %1 : vector<1x128xf32> to vector<2x128xf32>
    %3 = arith.mulf %0, %2 : vector<2x128xf32>
    %4 = vector.shape_cast %3 : vector<2x128xf32> to vector<2x4x32xf32>
    %cst = arith.constant dense<0.000000e+00> : vector<2x4xf32>
    %5 = vector.multi_reduction <add>, %4, %cst [2] : vector<2x4x32xf32> to vector<2x4xf32>
    %c0_3 = arith.constant 0 : index
    %6 = memref.load %arg1[%c0_3] : memref<1xf32, #tpu.memory_space<smem>>
    %7 = vector.broadcast %6 : f32 to vector<2x4xf32>
    %8 = arith.addf %5, %7 : vector<2x4xf32>
    %c0_4 = arith.constant 0 : index
    %c0_5 = arith.constant 0 : index
    %9 = vector.load %arg4[%c0_4, %c0_5] : memref<2x4xf32, #tpu.memory_space<vmem>>, vector<2x4xf32>
    tpu.vector_store %arg4[%c0_4, %c0_5], %8 {strides = array<i32>} : memref<2x4xf32, #tpu.memory_space<vmem>>, vector<2x4xf32>,
    return
  }
  func.func @transform_0(%arg0: i32, %arg1: memref<1xf32, #tpu.memory_space<smem>>) -> (i32, i32) {
    %c0_i32 = arith.constant 0 : i32
    %c0_i32_0 = arith.constant 0 : i32
    return %arg0, %c0_i32 : i32, i32
  }
  func.func @transform_1(%arg0: i32, %arg1: memref<1xf32, #tpu.memory_space<smem>>) -> (i32, i32) {
    %c0_i32 = arith.constant 0 : i32
    %c0_i32_0 = arith.constant 0 : i32
    %c0_i32_1 = arith.constant 0 : i32
    return %c0_i32, %c0_i32_0 : i32, i32
  }
  func.func @transform_2(%arg0: i32, %arg1: memref<1xf32, #tpu.memory_space<smem>>) -> (i32, i32) {
    %c0_i32 = arith.constant 0 : i32
    %c0_i32_0 = arith.constant 0 : i32
    return %arg0, %c0_i32 : i32, i32
  }
}

</mosaic_0001>

<bundles_post_ra>
// kernel: linear_model_forward.1
= control target key start
LH: loop header
LB: loop body
LE: loop exit
PB: predicated region body
PF: predicated region fallthrough
CT: control target
= control target key end

     0   :  { %v36_v3 = vlaneseq  ;;  %s96_s16 = smov 32   ;;  %s97_s17 = smov 96   ;;  %v99_v7 = vmov 1983009808   ;;  %v100_v10 = vmov 1934713408   ;;  %s134_s1 = inlined_call_operand.vmem [shape: f32[2,128], index: 1, kind: input, shape index: {}]   ;;  %s135_s2 = inlined_call_operand.vmem [shape: f32[1,128], index: 2, kind: input, shape index: {}]   ;;  %s136_s0 = inlined_call_operand.<no memory space> [shape: f32[1], index: 0, kind: input, shape index: {}]   ;;  %s137_s3 = inlined_call_operand.vmem [shape: f32[2,4], index: 3, kind: output, shape index: {}]  }
   0x1   :  { %v13_v0 = vld [vmem:[%s134_s1] sm:$0x3]  ;;  %s98_s18 = smov 64   ;;  %v34_v8 = vunpack.c.l.s4 %v99_v7  ;;  %v50_v11 = vunpack.c.l.s4 %v100_v10  ;;  %vm57_vm0 = vcmask 257024   ;;  %v101_v25 = vmov 0.0  }
   0x2   :  { %v89_v1 = vld [vmem:[%s135_s2] ss:$0 sm:$0xff]  ;;  %v37_v4 = vshrl.u32 %v36_v3, 7  ;;  %v71_v5 = vand.u32 127, %v36_v3  ;;  %v65_v28 = vstv %s136_s0  ;;  %vm80_vm1 = vcmask 1041409  }
   0x3   :  { %v21_v2 = vmul.f32 %v89_v1, %v13_v0  ;;  %v35_v9 = vunpack.c.0.s8 %v34_v8  ;;  %v51_v16 = vunpack.c.0.s8 %v50_v11  ;;  %vm83_vm2 = vcmask 25600  }
   0x4   :  { %v74_v6 = vsub.s32 %v71_v5, %v37_v4 }
   0x5   :  { %29 = vrot.lane.b32.xlu1 %v21_v2, %s96_s16  ;;  %23 = vrot.lane.b32.xlu0 %v21_v2, %s97_s17  ;;  %v38_v14 = vsub.s32 %v35_v9, %v37_v4  ;;  %v54_v21 = vsub.s32 %v51_v16, %v37_v4 }
   0x9   :  { %26 = vrot.lane.b32.xlu0 %v21_v2, %s98_s18 }
  0x77   :  { %v30_v12 = vpop.permute.xlu1 %29  ;;  %v24_v13 = vpop.permute.xlu0 %23 }
  0x78   :  { %v40_v15 = vcombine.low %v24_v13, %v30_v12 }
  0x7a   :  { %v47_v19 = vrot.slane %v40_v15, %v38_v14 }
  0x7b   :  { %v27_v17 = vpop.permute.xlu0 %26 }
  0x7c   :  { %v32_v18 = vcombine.low %v21_v2, %v27_v17 }
  0x7e   :  { %v39_v20 = vrot.slane %v32_v18, %v38_v14 }
  0x80   :  { %v48_v22 = vcombine.low %v39_v20, %v47_v19 }
  0x82   :  { %v55_v23 = vrot.slane %v48_v22, %v54_v21 }
  0x84   :  { %v58_v24 = vsel %vm57_vm0, %v55_v23, 0.0  ;;  %v56_v26 = vcombine.high %v55_v23, %v101_v25 }
  0x85   :  { %59 = vadd.xlane.f32.xlu1 %v58_v24 }
  0x86   :  { %v61_v27 = vsel %vm57_vm0, %v56_v26, 0.0 }
  0x87   :  { %62 = vadd.xlane.f32.xlu0 %v61_v27 }
 0x10e   :  { %v60_v29 = vpop.xlane.xlu1 %59 }
 0x10f   :  { %v66_v30 = vadd.f32 %v65_v28, %v60_v29 }
 0x110   :  { %v63_v31 = vpop.xlane.xlu0 %62 }
 0x111   :  { %v67_v32 = vadd.f32 %v65_v28, %v63_v31  ;;  %v75_v33 = vrot.slane %v66_v30, %v74_v6 }
 0x113   :  { %v79_v34 = vrot.slane %v67_v32, %v74_v6 }
 0x115   :  { %v81_v35 = vsel %vm80_vm1, %v79_v34, %v75_v33 }
 0x116   :  { %84 = vst.msk [vmem:[%s137_s3] sm:$0x3] %vm83_vm2, %v81_v35 }

</bundles_post_ra>
